<compile_context>
chip_gen: v7x
topology: tpu7x:2x2x1
jax: 0.10.0
libtpu: 0.0.40
codegen_flags: <defaults>
</compile_context>

<pallas_src>
import jax
import jax.numpy as jnp
from jax.experimental import pallas as pl
from jax.experimental.pallas import tpu as pltpu

_LANE = 128
_MAX_ROW_TILE = 1 << 16   # sanity cap on the second-minor block dim


def _round_up(a, b):
    return (a + b - 1) // b * b


def _row_align(itemsize):
    # Sub-32-bit dtypes pack along sublanes: 8 rows f32, 16 bf16, 32 int8/fp8.
    return max(8, 32 // itemsize)


def _chip_budget():
    """(total VMEM budget for pipelined blocks, scoped-vmem cap) per chip gen."""
    cap = 64 << 20  # conservative default: v7x-class (64 MiB VMEM per core)
    try:
        cap = int(getattr(pltpu.get_tpu_info(), "vmem_capacity_bytes", cap))
    except Exception:
        pass
    if cap >= (96 << 20):          # v5e / v6e class: 128 MiB VMEM
        return 64 << 20, 96 << 20
    return 32 << 20, 48 << 20      # v7x class: 64 MiB VMEM


def _pick_row_tile(rows, per_row_bytes, align, budget_bytes):
    """Budget-driven row tile (second-minor block dim); keeps >=2 row blocks."""
    tile = budget_bytes // max(per_row_bytes, 1)
    tile = max(align, (tile // align) * align)
    tile = min(tile, _MAX_ROW_TILE)
    if rows >= 2 * align:
        # >= 2 row blocks so the "parallel" rows axis can split across the
        # two TensorCores on v7x.
        tile = min(tile, _round_up(pl.cdiv(rows, 2), align))
    else:
        tile = min(tile, rows)     # block == full dim is always legal
    return int(max(tile, 1))


def _cost(rows, D, in_itemsize, out_itemsize):
    return pl.CostEstimate(
        flops=2 * rows * D,
        transcendentals=rows,
        bytes_accessed=rows * D * in_itemsize + rows * out_itemsize,
    )


def _norm_small_d(x2d, out_dtype):
    """Fast path for D <= 64: fold G = 128 // D rows into one W = G*D-lane row."""
    rows, D = x2d.shape
    itemsize = jnp.dtype(x2d.dtype).itemsize
    out_itemsize = jnp.dtype(out_dtype).itemsize
    align = _row_align(itemsize)
    G = _LANE // D
    W = G * D                       # folded lane width (<= 128)
    rows_f = rows // G
    x_f = x2d.reshape(rows_f, W)    # metadata-only, row-major fold

    budget, vmem_cap = _chip_budget()
    # Per folded row (double-buffered): input + output, both lane-padded to 128
    # in VMEM.  The resident group matrix is negligible.
    per_row = 2 * _LANE * itemsize + 2 * _LANE * out_itemsize
    row_tile = _pick_row_tile(rows_f, per_row, align, budget)
    n_row = pl.cdiv(rows_f, row_tile)

    # 0/1 group-sum matrix m[l, g] = 1 iff lane l belongs to group g.  Built
    # once on the host, passed as a resident input (index_map is constant so
    # Pallas never re-fetches it).  bf16 is exact for 0/1.
    l_idx = jax.lax.broadcasted_iota(jnp.int32, (W, G), 0)
    g_idx = jax.lax.broadcasted_iota(jnp.int32, (W, G), 1)
    m = ((l_idx >= g_idx * D) & (l_idx < (g_idx + 1) * D)).astype(jnp.bfloat16)

    def kernel(x_ref, m_ref, o_ref):
        x = x_ref[...].astype(jnp.float32)          # (T, W), lane-dense load
        xsq = x * x
        mm = m_ref[...]                             # (W, G) bf16, resident
        # hi/lo bf16 split -> two MXU passes.  lo is explicitly bf16, so the
        # grouped sum carries ~2^-18 relative error (documented; a third pass
        # would make it MXU-bound on v7x for no practical gain here).
        hi = xsq.astype(jnp.bfloat16)
        lo = (xsq - hi.astype(jnp.float32)).astype(jnp.bfloat16)
        s = (jnp.dot(hi, mm, preferred_element_type=jnp.float32)
             + jnp.dot(lo, mm, preferred_element_type=jnp.float32))
        s = jnp.maximum(s, 0.0)                     # guard tiny negative roundoff
        o_ref[...] = jnp.sqrt(s).astype(o_ref.dtype)   # (T, G)

    rt = _round_up(row_tile, align)
    usage = (2 * rt * _LANE * itemsize
             + 2 * _round_up(row_tile, 8) * _LANE * out_itemsize
             + _LANE * _LANE * 2)
    vmem_limit = int(min(vmem_cap, max(32 << 20, usage + (8 << 20))))

    out = pl.pallas_call(
        kernel,
        out_shape=jax.ShapeDtypeStruct((rows_f, G), out_dtype),
        grid_spec=pltpu.PrefetchScalarGridSpec(
            num_scalar_prefetch=0,
            grid=(n_row,),
            in_specs=[pl.BlockSpec((row_tile, W), lambda i: (i, 0)),
                      pl.BlockSpec((W, G), lambda i: (0, 0))],
            out_specs=pl.BlockSpec((row_tile, G), lambda i: (i, 0)),
        ),
        compiler_params=pltpu.CompilerParams(
            dimension_semantics=("parallel",),
            vmem_limit_bytes=vmem_limit,
        ),
        cost_estimate=_cost(rows, D, itemsize, out_itemsize),
    )(x_f, m)
    return out.reshape(rows)


def _norm_general(x2d, out_dtype, row_tile=None, d_tile=None):
    """General path: (row blocks[, D blocks]) grid with f32 accumulation."""
    rows, D = x2d.shape
    itemsize = jnp.dtype(x2d.dtype).itemsize
    out_itemsize = jnp.dtype(out_dtype).itemsize
    align = _row_align(itemsize)
    budget, vmem_cap = _chip_budget()

    # Reduction-axis tile: keep D untiled unless a >=512-row block with the
    # full D would blow the block budget.  A tiled d_tile is a multiple of 128
    # so the in-kernel lane-group fold stays a pure VPU op.
    if d_tile is None:
        full_d_row = 2 * _round_up(D, _LANE) * itemsize + 2 * _LANE * out_itemsize
        if full_d_row * min(max(rows, 1), 512) <= budget:
            d_tile = D
        else:
            d_tile = (budget // (2 * 512 * itemsize)) // _LANE * _LANE
            d_tile = int(max(d_tile, _LANE))
    else:
        d_tile = int(min(d_tile, D))
        if d_tile < D:
            d_tile = _round_up(d_tile, _LANE)   # keep lane-group fold simple
    if d_tile >= D:
        d_tile = D
    n_d = int(pl.cdiv(D, d_tile))
    d_ragged = (D % d_tile) != 0                # only possible when n_d > 1

    per_row = (2 * _round_up(min(d_tile, D), _LANE) * itemsize
               + 2 * _LANE * out_itemsize       # output buffers lane-pad to 128
               + (_LANE * 4 if n_d > 1 else 0))  # single-buffered accumulator
    if row_tile is None:
        row_tile = _pick_row_tile(rows, per_row, align, budget)
    else:
        row_tile = int(min(rows, _round_up(row_tile, align)))
    n_row = pl.cdiv(rows, row_tile)

    rt8 = _round_up(row_tile, 8)
    usage = (2 * _round_up(row_tile, align) * _round_up(min(d_tile, D), _LANE) * itemsize
             + 2 * rt8 * _LANE * out_itemsize
             + (rt8 * _LANE * 4 if n_d > 1 else 0))
    vmem_limit = int(min(vmem_cap, max(32 << 20, usage + (8 << 20))))

    if n_d == 1:
        def kernel(x_ref, o_ref):
            x = x_ref[...].astype(jnp.float32)
            s = jnp.sum(x * x, axis=-1, keepdims=True)
            o_ref[...] = jnp.sqrt(s).astype(o_ref.dtype)

        grid = (n_row,)
        in_specs = [pl.BlockSpec((row_tile, D), lambda i: (i, 0))]
        out_specs = pl.BlockSpec((row_tile, 1), lambda i: (i, 0))
        scratch_shapes = []
        dim_sem = ("parallel",)
    else:
        n_groups = d_tile // _LANE

        def kernel(x_ref, o_ref, acc_ref):
            k = pl.program_id(1)

            @pl.when(k == 0)
            def _init():
                acc_ref[...] = jnp.zeros_like(acc_ref)

            x = x_ref[...].astype(jnp.float32)
            if d_ragged:  # static: mask garbage lanes of the ragged last block
                col = jax.lax.broadcasted_iota(jnp.int32, x.shape, 1) + k * d_tile
                x = jnp.where(col < D, x, 0.0)
            xsq = x * x
            # Fold the d_tile lanes into 128 partial sums on the VPU (static,
            # 128-aligned lane slices -> no relayout); the cross-lane XLU
            # reduce happens once per row block, in the finalize.
            p = xsq[:, 0:_LANE]
            for g in range(1, n_groups):
                p = p + xsq[:, g * _LANE:(g + 1) * _LANE]
            acc_ref[...] += p

            @pl.when(k == n_d - 1)
            def _finalize():
                s = jnp.sum(acc_ref[...], axis=-1, keepdims=True)
                o_ref[...] = jnp.sqrt(s).astype(o_ref.dtype)

        grid = (n_row, n_d)
        in_specs = [pl.BlockSpec((row_tile, d_tile), lambda i, k: (i, k))]
        out_specs = pl.BlockSpec((row_tile, 1), lambda i, k: (i, 0))
        scratch_shapes = [pltpu.VMEM((row_tile, _LANE), jnp.float32)]
        dim_sem = ("parallel", "arbitrary")

    out = pl.pallas_call(
        kernel,
        out_shape=jax.ShapeDtypeStruct((rows, 1), out_dtype),
        grid_spec=pltpu.PrefetchScalarGridSpec(
            num_scalar_prefetch=0,
            grid=grid,
            in_specs=in_specs,
            out_specs=out_specs,
            scratch_shapes=scratch_shapes,
        ),
        compiler_params=pltpu.CompilerParams(
            dimension_semantics=dim_sem,
            vmem_limit_bytes=vmem_limit,
        ),
        cost_estimate=_cost(rows, D, itemsize, out_itemsize),
    )(x2d)
    return out[:, 0]


def euclidean_norm(x: jax.Array, *, row_tile=None, d_tile=None) -> jax.Array:
    """sqrt(sum(x**2, axis=-1)) — matches torch.sqrt(torch.sum(x**2, dim=-1))."""
    orig_shape = x.shape
    D = orig_shape[-1]
    lead = orig_shape[:-1]
    rows = 1
    for s in lead:
        rows *= s
    if rows == 0 or D == 0:
        return jnp.zeros(lead, dtype=x.dtype)

    x2d = x.reshape(rows, D)  # metadata-only
    use_fast = (row_tile is None and d_tile is None and (_LANE // D) >= 2)
    if use_fast:
        G = _LANE // D
        rows_pad = _round_up(rows, G)
        if rows_pad != rows:
            # One extra HBM round-trip over the data, but the folded fast path
            # still beats the lane-sparse general path for D <= 64.  No copy at
            # all when rows % G == 0 (the common case).
            x2d = jnp.pad(x2d, ((0, rows_pad - rows), (0, 0)))
        out = _norm_small_d(x2d, x.dtype)[:rows]
    else:
        out = _norm_general(x2d, x.dtype, row_tile=row_tile, d_tile=d_tile)
    return out.reshape(lead)


if __name__ == "__main__":
    key = jax.random.PRNGKey(0)

    # Small NCHW-like input; last dim (W=16) is the reduced axis (torch dim=-1).
    x = jax.random.normal(key, (2, 4, 16, 16), dtype=jnp.float32)
    y = euclidean_norm(x)
    jax.block_until_ready(y)
    y_ref = jnp.sqrt(jnp.sum(x * x, axis=-1))
    assert y.shape == y_ref.shape == (2, 4, 16)
    assert jnp.allclose(y, y_ref, atol=1e-5, rtol=1e-5)

    # General path: ragged row edge + tiled/ragged D axis + partial-sum acc.
    x2 = jax.random.normal(jax.random.PRNGKey(1), (50, 200), dtype=jnp.float32)
    y2 = euclidean_norm(x2, row_tile=16, d_tile=128)
    jax.block_until_ready(y2)
    y2_ref = jnp.sqrt(jnp.sum(x2 * x2, axis=-1))
    assert y2.shape == y2_ref.shape == (50,)
    assert jnp.allclose(y2, y2_ref, atol=1e-5, rtol=1e-5)

    # Fast path with rows % G != 0 (row padding) and a non-divisor D (W = 96).
    x3 = jax.random.normal(jax.random.PRNGKey(2), (37, 48), dtype=jnp.float32)
    y3 = euclidean_norm(x3)
    jax.block_until_ready(y3)
    y3_ref = jnp.sqrt(jnp.sum(x3 * x3, axis=-1))
    assert y3.shape == (37,)
    assert jnp.allclose(y3, y3_ref, atol=1e-5, rtol=1e-5)

    # General path, untiled D >= 128, default tiling.
    x4 = jax.random.normal(jax.random.PRNGKey(3), (24, 256), dtype=jnp.float32)
    y4 = euclidean_norm(x4)
    jax.block_until_ready(y4)
    y4_ref = jnp.sqrt(jnp.sum(x4 * x4, axis=-1))
    assert jnp.allclose(y4, y4_ref, atol=1e-5, rtol=1e-5)

    print("KERNEL_OK")
</pallas_src>

<mosaic_0001>
module attributes {stable_mosaic.version = 11 : i64} {
  func.func @kernel(%arg0: i32, %arg1: memref<8x128xf32, #tpu.memory_space<vmem>>, %arg2: memref<128x8xbf16, #tpu.memory_space<vmem>>, %arg3: memref<8x8xf32, #tpu.memory_space<vmem>>) attributes {dimension_semantics = [#tpu.dimension_semantics<parallel>], iteration_bounds = array<i64: 2>, scalar_prefetch = 0 : i64, scratch_operands = 0 : i64, tpu.core_type = #tpu.core_type<tc>, window_params = [{transform_indices = @transform_0, window_bounds = array<i64: 8, 128>}, {pipeline_mode = #tpu.pipeline_mode<synchronous>, transform_indices = @transform_1, window_bounds = array<i64: 128, 8>}, {transform_indices = @transform_2, window_bounds = array<i64: 8, 8>}]} {
    %c0 = arith.constant 0 : index
    %c0_0 = arith.constant 0 : index
    %0 = vector.load %arg1[%c0, %c0_0] : memref<8x128xf32, #tpu.memory_space<vmem>>, vector<8x128xf32>
    %1 = arith.mulf %0, %0 : vector<8x128xf32>
    %c0_1 = arith.constant 0 : index
    %c0_2 = arith.constant 0 : index
    %2 = vector.load %arg2[%c0_1, %c0_2] : memref<128x8xbf16, #tpu.memory_space<vmem>>, vector<128x8xbf16>
    %3 = arith.truncf %1 : vector<8x128xf32> to vector<8x128xbf16>
    %4 = arith.extf %3 : vector<8x128xbf16> to vector<8x128xf32>
    %5 = arith.subf %1, %4 : vector<8x128xf32>
    %6 = arith.truncf %5 : vector<8x128xf32> to vector<8x128xbf16>
    %cst = arith.constant dense<0.000000e+00> : vector<8x8xf32>
    %7 = tpu.matmul %3, %2, %cst {dimension_numbers = #tpu.dot_dimension_numbers<[1], [0], [0], [1], [0, 0, 1, 1], [], []>} : vector<8x128xbf16>, vector<128x8xbf16>, vector<8x8xf32> -> vector<8x8xf32>
    %cst_3 = arith.constant dense<0.000000e+00> : vector<8x8xf32>
    %8 = tpu.matmul %6, %2, %cst_3 {dimension_numbers = #tpu.dot_dimension_numbers<[1], [0], [0], [1], [0, 0, 1, 1], [], []>} : vector<8x128xbf16>, vector<128x8xbf16>, vector<8x8xf32> -> vector<8x8xf32>
    %9 = arith.addf %7, %8 : vector<8x8xf32>
    %cst_4 = arith.constant 0.000000e+00 : f32
    %10 = vector.broadcast %cst_4 : f32 to vector<8x8xf32>
    %11 = arith.maximumf %9, %10 : vector<8x8xf32>
    %12 = math.sqrt %11 : vector<8x8xf32>
    %c0_5 = arith.constant 0 : index
    %c0_6 = arith.constant 0 : index
    %13 = vector.load %arg3[%c0_5, %c0_6] : memref<8x8xf32, #tpu.memory_space<vmem>>, vector<8x8xf32>
    tpu.vector_store %arg3[%c0_5, %c0_6], %12 {strides = array<i32>} : memref<8x8xf32, #tpu.memory_space<vmem>>, vector<8x8xf32>,
    return
  }
  func.func @transform_0(%arg0: i32) -> (i32, i32) {
    %c0_i32 = arith.constant 0 : i32
    %c0_i32_0 = arith.constant 0 : i32
    return %arg0, %c0_i32 : i32, i32
  }
  func.func @transform_1(%arg0: i32) -> (i32, i32) {
    %c0_i32 = arith.constant 0 : i32
    %c0_i32_0 = arith.constant 0 : i32
    %c0_i32_1 = arith.constant 0 : i32
    return %c0_i32, %c0_i32_0 : i32, i32
  }
  func.func @transform_2(%arg0: i32) -> (i32, i32) {
    %c0_i32 = arith.constant 0 : i32
    %c0_i32_0 = arith.constant 0 : i32
    return %arg0, %c0_i32 : i32, i32
  }
}

</mosaic_0001>

<bundles_post_ra>
// kernel: tpu_custom_call.1
= control target key start
LH: loop header
LB: loop body
LE: loop exit
PB: predicated region body
PF: predicated region fallthrough
CT: control target
= control target key end

     0   :  { %s474_s9 = smov 0   ;;  %s522_s0 = inlined_call_operand.vmem [shape: f32[16,128], index: 0, kind: input, shape index: {}]   ;;  %s523_s1 = inlined_call_operand.vmem [shape: bf16[128,8], index: 1, kind: input, shape index: {}]   ;;  %s524_s2 = inlined_call_operand.vmem [shape: f32[16,8], index: 2, kind: output, shape index: {}]  }
   0x1 LB: > { %s353_s10 = sadd.s32 4294967295, %s455_s9   ;;  %p357_p0 = scmp.ge.s32.totalorder %s455_s9, 1  ;;  %s455_s9 = sphi %s474_s9, %s12_s9  }
   0x2   : > { %p111_p1 = scmp.lt.s32.totalorder %s455_s9, 3 }
   0x4   : > { %p112_p2 = pnand %p357_p0, %p111_p1 }
   0x5   : > { %v439_v0 = vld [vmem:[%s523_s1] sm:$0xff] (!%p112_p2)   ;;  %v457_v1 = vmov (!%p112_p2), 0.0   ;;  %v440_v2 = vld [vmem:[%s523_s1 + $0x8] sm:$0xff] (!%p112_p2)   ;;  %p131_p3 = scmp.lt.s32.totalorder (!%p112_p2), %s353_s10, 1  ;;  %vm458_vm0 = vmmov (!%p112_p2), 0   ;;  %v441_v3 = vld [vmem:[%s523_s1 + $0x10] sm:$0xff] (!%p112_p2)  }
   0x6   : > { %115 = sbr.rel (%p112_p2) target bundleno = 270 (0x10e), region = 28  ;;  %388 = vmatprep.subr.bf16.mxu1 (!%p112_p2), %v457_v1  ;;  %408 = vmatprep.subr.bf16.mxu0 (!%p112_p2), %v457_v1  ;;  %v442_v4 = vld [vmem:[%s523_s1 + $0x18] sm:$0xff] (!%p112_p2)   ;;  %v443_v7 = vld [vmem:[%s523_s1 + $0x20] sm:$0xff] (!%p112_p2)   ;;  %v444_v9 = vld [vmem:[%s523_s1 + $0x28] sm:$0xff] (!%p112_p2)   ;;  %vm298_vm2 = vcmask (!%p112_p2), 64512  }
   0x7   : > { %389 = vmatpush3.bf16.msra.mxu1 (!%p112_p2), %v439_v0  ;;  %409 = vmatpush3.bf16.msra.mxu0 (!%p112_p2), %v439_v0  ;;  %v445_v11 = vld [vmem:[%s523_s1 + $0x30] sm:$0xff] (!%p112_p2)   ;;  %v446_v13 = vld [vmem:[%s523_s1 + $0x38] sm:$0xff] (!%p112_p2)  }
   0x8   : > { %390 = vmatprep.subr.bf16.mxu1 (!%p112_p2), %v457_v1  ;;  %410 = vmatprep.subr.bf16.mxu0 (!%p112_p2), %v457_v1 }
   0x9   : > { %404 = vmatprep.mubr.msk.bf16.mxu1 (!%p112_p2), %vm458_vm0, %v457_v1  ;;  %424 = vmatprep.mubr.msk.bf16.mxu0 (!%p112_p2), %vm458_vm0, %v457_v1 }
   0xb   : > { %391 = vmatpush3.bf16.msra.mxu1 (!%p112_p2), %v440_v2  ;;  %411 = vmatpush3.bf16.msra.mxu0 (!%p112_p2), %v440_v2 }
   0xc   : > { %392 = vmatprep.subr.bf16.mxu1 (!%p112_p2), %v457_v1  ;;  %412 = vmatprep.subr.bf16.mxu0 (!%p112_p2), %v457_v1 }
   0xd   : > { %s526_s10 = smov (!%p131_p3, %s353_s10), 1 }
   0xe   : > { %s358_s17 = sshll.u32 %s526_s10, 3 }
   0xf   : > { %s134_s20 = scalar_lea.vmem %s522_s0, %s358_s17  ;;  %393 = vmatpush3.bf16.msra.mxu1 %v441_v3  ;;  %413 = vmatpush3.bf16.msra.mxu0 %v441_v3  ;;  %s138_s5 = scalar_lea.vmem %s524_s2, %s358_s17 }
  0x10   : > { %v140_v5 = vld [vmem:[%s134_s20] sm:$0xff]  ;;  %394 = vmatprep.subr.bf16.mxu1 %v457_v1  ;;  %414 = vmatprep.subr.bf16.mxu0 %v457_v1 }
  0x11   : > { %v141_v6 = vmul.f32 %v140_v5, %v140_v5 }
  0x13   : > { %395 = vmatpush3.bf16.msra.mxu1 %v442_v4  ;;  %415 = vmatpush3.bf16.msra.mxu0 %v442_v4  ;;  %v158_v8 = vpack.c.bf16 %v141_v6, %v141_v6 }
  0x14   : > { %396 = vmatprep.subr.bf16.mxu1 %v457_v1  ;;  %416 = vmatprep.subr.bf16.mxu0 %v457_v1 }
  0x15   : > { %v159_v10 = vunpack.c.l.bf16 %v158_v8 }
  0x17   : > { %397 = vmatpush3.bf16.msra.mxu1 %v443_v7  ;;  %417 = vmatpush3.bf16.msra.mxu0 %v443_v7  ;;  %v160_v12 = vsub.f32 %v141_v6, %v159_v10 }
  0x18   : > { %398 = vmatprep.subr.bf16.mxu1 %v457_v1  ;;  %418 = vmatprep.subr.bf16.mxu0 %v457_v1 }
  0x19   : > { %v161_v14 = vpack.c.bf16 %v160_v12, %v160_v12 }
  0x1b   : > { %399 = vmatpush3.bf16.msra.mxu1 %v444_v9  ;;  %419 = vmatpush3.bf16.msra.mxu0 %v444_v9 }
  0x1c   : > { %400 = vmatprep.subr.bf16.mxu1 %v457_v1  ;;  %420 = vmatprep.subr.bf16.mxu0 %v457_v1 }
  0x1f   : > { %401 = vmatpush3.bf16.msra.mxu1 %v445_v11  ;;  %421 = vmatpush3.bf16.msra.mxu0 %v445_v11 }
  0x20   : > { %402 = vmatprep.subr.bf16.mxu1 %v457_v1  ;;  %422 = vmatprep.subr.bf16.mxu0 %v457_v1 }
  0x23   : > { %403 = vmatpush3.bf16.msra.mxu1 %v446_v13  ;;  %423 = vmatpush3.bf16.msra.mxu0 %v446_v13 }
  0x26   : > { %405 = vmatmul.mubr.bf16.vlgmr.msra.gmra.mrb[0].mxu1 %v161_v14  ;;  %425 = vmatmul.mubr.bf16.vlgmr.msra.gmra.mrb[0].mxu0 %v158_v8 }
  0xf9   : > { %v244_v15 = vpop.f32.mrb[0].mxu1  ;;  %v284_v16 = vpop.f32.mrb[0].mxu0 }
  0xfa   : > { %v285_v17 = vadd.f32 %v284_v16, %v244_v15  ;;  %v406_v18 = vpop.f32.mrb[1].mxu1  ;;  %v426_v19 = vpop.f32.mrb[1].mxu0 }
  0xfb   : > { %v247_v20 = vpop.f32.mrb[2].mxu1  ;;  %v287_v21 = vpop.f32.mrb[2].mxu0 }
  0xfc   : > { %v290_v22 = vmax.f32 %v285_v17, 0.0  ;;  %v407_v23 = vpop.f32.mrb[3].mxu1  ;;  %v427_v24 = vpop.f32.mrb[3].mxu0 }
  0xfe   : > { %447 = vrsqrt.f32 %v290_v22  ;;  %vm293_vm1 = vcmp.eq.f32.partialorder %v290_v22, inf  ;;  %v296_v27 = vand.u32 2147483648, %v290_v22  ;;  %vm295_vm3 = vcmp.eq.f32.partialorder %v290_v22, 0.0 }
 0x108   : > { %v448_v25 = vpop.eup %447 }
 0x109   : > { %v292_v26 = vmul.f32 %v448_v25, %v290_v22 }
 0x10b   : > { %v294_v28 = vsel %vm293_vm1, %v290_v22, %v292_v26 }
 0x10c   : > { %v297_v29 = vsel %vm295_vm3, %v296_v27, %v294_v28 }
 0x10d   : > { %299 = vst.msk [vmem:[%s138_s5] sm:$0xff] %vm298_vm2, %v297_v29 }
 0x10e PF: > { %s12_s9 = sadd.s32 1, %s455_s9  }
 0x10f   : > { %p9_p4 = scmp.ge.s32.totalorder %s12_s9, 4  }
 0x111   :  { %11 = sbr.rel (!%p9_p4) target bundleno = 1 (0x1), region = 58 }

</bundles_post_ra>
